<compile_context>
chip_gen: v6e
topology: v6e:2x2x1
jax: 0.10.0
libtpu: 0.0.40
codegen_flags: <defaults>
</compile_context>

<pallas_src>
import jax
import jax.numpy as jnp
from jax.experimental import pallas as pl
from jax.experimental.pallas import tpu as pltpu


def _round_up(x, m):
    return (x + m - 1) // m * m


def _choose_tb(batch, tb_max):
    """Batch tile: multiple of 16 (clean bf16 sublane packing).  Aim for >=2
    grid steps (v7x shards the 'parallel' axis over 2 TensorCores) and >=4
    steps once that still leaves TB >= 256 rows per tile."""
    b16 = _round_up(batch, 16)
    tb = min(_round_up(max(tb_max, 16), 16), b16)
    if b16 >= 32 and b16 // tb < 2:
        tb = _round_up(pl.cdiv(b16, 2), 16)
    if b16 >= 4 * 256 and b16 // tb < 4:
        tb = _round_up(pl.cdiv(b16, 4), 16)
    return tb


def decoder_kernel(x_ref,
                   w1_ref, b1_ref,
                   w2_ref, b2_ref,
                   w3_ref, b3_ref,
                   w4_ref, b4_ref,
                   o_ref):
    """One batch tile of the fused 4-layer MLP (eval mode: dropout = identity).

    x tile : [TB, latent]   f32  (cast to bf16 in-kernel)
    weights: bf16, hidden dim zero-padded; biases f32
    output : [TB, out_dim]  f32
    """
    x = x_ref[...].astype(w1_ref.dtype)

    h = jnp.dot(x, w1_ref[...], preferred_element_type=jnp.float32) + b1_ref[...]
    h = jnp.maximum(h, 0.0)

    h = jnp.dot(h.astype(w2_ref.dtype), w2_ref[...],
                preferred_element_type=jnp.float32) + b2_ref[...]
    h = jnp.maximum(h, 0.0)

    h = jnp.dot(h.astype(w3_ref.dtype), w3_ref[...],
                preferred_element_type=jnp.float32) + b3_ref[...]
    h = jnp.maximum(h, 0.0)

    y = jnp.dot(h.astype(w4_ref.dtype), w4_ref[...],
                preferred_element_type=jnp.float32) + b4_ref[...]
    o_ref[...] = y.astype(o_ref.dtype)


def prepare_params(params):
    """Pad + cast the weights ONCE (hoisted out of the forward pass).

    Weights -> bf16 with the hidden dim zero-padded to a lane multiple (256
    once hidden >= 256, else 128); biases -> f32.  The latent (K of fc1) and
    output (N of fc4) dims stay unpadded.  Zero padding keeps the math exact.
    """
    w1, b1 = params["fc1"]
    w2, b2 = params["fc2"]
    w3, b3 = params["fc3"]
    w4, b4 = params["fc4"]
    latent, hidden = w1.shape
    out_dim = w4.shape[1]
    unit = 256 if hidden >= 256 else 128
    hp = _round_up(hidden, unit)

    def pad2(a, r, c):
        return jnp.pad(a, ((0, r - a.shape[0]), (0, c - a.shape[1])))

    return {
        "w1": pad2(w1, latent, hp).astype(jnp.bfloat16),
        "b1": pad2(b1, 1, hp).astype(jnp.float32),
        "w2": pad2(w2, hp, hp).astype(jnp.bfloat16),
        "b2": pad2(b2, 1, hp).astype(jnp.float32),
        "w3": pad2(w3, hp, hp).astype(jnp.bfloat16),
        "b3": pad2(b3, 1, hp).astype(jnp.float32),
        "w4": pad2(w4, hp, out_dim).astype(jnp.bfloat16),
        "b4": b4.astype(jnp.float32),
        "latent": latent, "hidden": hidden, "out_dim": out_dim, "hp": hp,
    }


def decoder_forward(x, prepared, *, tb=512, training=False):
    """x: [B, latent] f32.  prepared: output of prepare_params()."""
    if training:
        # TODO(synk): training-mode dropout (p=0.3) would need pltpu.prng_seed +
        # pltpu.prng_random_bits Bernoulli masks scaled by 1/(1-p); this kernel
        # implements the eval-mode forward (dropout = identity).
        raise NotImplementedError("decoder_forward implements eval mode only")

    B, latent = x.shape
    assert latent == prepared["latent"]
    out_dim = prepared["out_dim"]
    hp = prepared["hp"]

    TB = _choose_tb(B, tb)
    Bp = _round_up(B, TB)
    grid = (Bp // TB,)

    # Only the batch rows are padded (to a TB multiple); the latent dim stays
    # unpadded f32 and is cast to bf16 inside the kernel.
    x_p = jnp.pad(x, ((0, Bp - B), (0, 0))) if Bp != B else x

    weights = (prepared["w1"], prepared["b1"],
               prepared["w2"], prepared["b2"],
               prepared["w3"], prepared["b3"],
               prepared["w4"], prepared["b4"])

    # VMEM budget: double-buffered x/out tiles + (ideally single-buffered)
    # resident weights/biases + f32 intermediates, with headroom, clamped
    # below the physical per-core VMEM (64 MiB on v7x).
    w_bytes = sum(int(w.size) * w.dtype.itemsize for w in weights)
    vmem_bytes = 2 * TB * (latent + out_dim) * 4 + w_bytes + 4 * TB * hp * 4
    try:
        vmem_cap = pltpu.get_tpu_info().vmem_capacity_bytes
    except Exception:
        vmem_cap = 64 << 20  # v7x per-TensorCore VMEM (smallest generation)
    vmem_limit = int(min(max(2 * vmem_bytes + (4 << 20), 16 << 20),
                         (vmem_cap * 7) // 8))

    def run(single_buffer_weights):
        res_kwargs = ({"pipeline_mode": pl.Buffered(1)}
                      if single_buffer_weights else {})

        def resident_spec(shape):
            # Constant block index -> fetched once, VMEM-resident across steps.
            return pl.BlockSpec(shape, lambda i: (0,) * len(shape), **res_kwargs)

        return pl.pallas_call(
            decoder_kernel,
            out_shape=jax.ShapeDtypeStruct((Bp, out_dim), jnp.float32),
            grid=grid,
            in_specs=[pl.BlockSpec((TB, latent), lambda i: (i, 0))]
                     + [resident_spec(w.shape) for w in weights],
            out_specs=pl.BlockSpec((TB, out_dim), lambda i: (i, 0)),
            compiler_params=pltpu.CompilerParams(
                dimension_semantics=("parallel",),
                vmem_limit_bytes=vmem_limit,
            ),
        )(x_p, *weights)

    try:
        out_padded = run(True)      # single-buffered resident weights
    except Exception:
        out_padded = run(False)     # fall back to default double-buffering

    return out_padded[:B] if Bp != B else out_padded


def init_params(key, latent_dim, hidden_size, output_size):
    """Deterministic synthetic init (Kaiming-ish uniform like torch Linear)."""
    dims = [(latent_dim, hidden_size),
            (hidden_size, hidden_size),
            (hidden_size, hidden_size),
            (hidden_size, output_size)]
    names = ["fc1", "fc2", "fc3", "fc4"]
    params = {}
    for name, (din, dout) in zip(names, dims):
        key, kw, kb = jax.random.split(key, 3)
        bound = 1.0 / jnp.sqrt(din)
        # stored as [in, out] so the kernel does x @ W
        w = jax.random.uniform(kw, (din, dout), jnp.float32, -bound, bound)
        b = jax.random.uniform(kb, (1, dout), jnp.float32, -bound, bound)
        params[name] = (w, b)
    return params


def decoder_reference(x, params):
    """Plain-JAX reference mirroring the kernel's bf16-weight / f32-accum math."""
    h = x.astype(jnp.bfloat16)
    for name in ("fc1", "fc2", "fc3"):
        w, b = params[name]
        h = jnp.dot(h, w.astype(jnp.bfloat16),
                    preferred_element_type=jnp.float32) + b
        h = jnp.maximum(h, 0.0).astype(jnp.bfloat16)
    w, b = params["fc4"]
    return jnp.dot(h, w.astype(jnp.bfloat16),
                   preferred_element_type=jnp.float32) + b


if __name__ == "__main__":
    key = jax.random.PRNGKey(0)
    latent_dim, hidden_size, output_size = 16, 32, 8
    batch = 24  # small, but _choose_tb -> TB=16 gives a 2-step batch grid

    kx, kp = jax.random.split(key)
    x = jax.random.normal(kx, (batch, latent_dim), jnp.float32)
    params = init_params(kp, latent_dim, hidden_size, output_size)

    prepared = prepare_params(params)          # pad/cast weights once
    out = decoder_forward(x, prepared)
    out = jax.block_until_ready(out)

    ref = decoder_reference(x, params)
    assert out.shape == (batch, output_size)
    assert jnp.allclose(out, ref, atol=1e-2, rtol=1e-2), "mismatch vs reference"

    print("KERNEL_OK")
</pallas_src>

<mosaic_0001>
module attributes {stable_mosaic.version = 11 : i64} {
  func.func @decoder_kernel(%arg0: i32, %arg1: memref<16x16xf32, #tpu.memory_space<vmem>>, %arg2: memref<16x128xbf16, #tpu.memory_space<vmem>>, %arg3: memref<1x128xf32, #tpu.memory_space<vmem>>, %arg4: memref<128x128xbf16, #tpu.memory_space<vmem>>, %arg5: memref<1x128xf32, #tpu.memory_space<vmem>>, %arg6: memref<128x128xbf16, #tpu.memory_space<vmem>>, %arg7: memref<1x128xf32, #tpu.memory_space<vmem>>, %arg8: memref<128x8xbf16, #tpu.memory_space<vmem>>, %arg9: memref<1x8xf32, #tpu.memory_space<vmem>>, %arg10: memref<16x8xf32, #tpu.memory_space<vmem>>) attributes {dimension_semantics = [#tpu.dimension_semantics<parallel>], iteration_bounds = array<i64: 2>, scalar_prefetch = 0 : i64, scratch_operands = 0 : i64, tpu.core_type = #tpu.core_type<tc>, window_params = [{transform_indices = @transform_0, window_bounds = array<i64: 16, 16>}, {pipeline_mode = #tpu.pipeline_mode<synchronous>, transform_indices = @transform_1, window_bounds = array<i64: 16, 128>}, {pipeline_mode = #tpu.pipeline_mode<synchronous>, transform_indices = @transform_2, window_bounds = array<i64: 1, 128>}, {pipeline_mode = #tpu.pipeline_mode<synchronous>, transform_indices = @transform_3, window_bounds = array<i64: 128, 128>}, {pipeline_mode = #tpu.pipeline_mode<synchronous>, transform_indices = @transform_4, window_bounds = array<i64: 1, 128>}, {pipeline_mode = #tpu.pipeline_mode<synchronous>, transform_indices = @transform_5, window_bounds = array<i64: 128, 128>}, {pipeline_mode = #tpu.pipeline_mode<synchronous>, transform_indices = @transform_6, window_bounds = array<i64: 1, 128>}, {pipeline_mode = #tpu.pipeline_mode<synchronous>, transform_indices = @transform_7, window_bounds = array<i64: 128, 8>}, {pipeline_mode = #tpu.pipeline_mode<synchronous>, transform_indices = @transform_8, window_bounds = array<i64: 1, 8>}, {transform_indices = @transform_9, window_bounds = array<i64: 16, 8>}]} {
    %c0 = arith.constant 0 : index
    %c0_0 = arith.constant 0 : index
    %0 = vector.load %arg1[%c0, %c0_0] : memref<16x16xf32, #tpu.memory_space<vmem>>, vector<16x16xf32>
    %1 = arith.truncf %0 : vector<16x16xf32> to vector<16x16xbf16>
    %c0_1 = arith.constant 0 : index
    %c0_2 = arith.constant 0 : index
    %2 = vector.load %arg2[%c0_1, %c0_2] : memref<16x128xbf16, #tpu.memory_space<vmem>>, vector<16x128xbf16>
    %cst = arith.constant dense<0.000000e+00> : vector<16x128xf32>
    %3 = tpu.matmul %1, %2, %cst {dimension_numbers = #tpu.dot_dimension_numbers<[1], [0], [0], [1], [0, 0, 1, 1], [], []>} : vector<16x16xbf16>, vector<16x128xbf16>, vector<16x128xf32> -> vector<16x128xf32>
    %c0_3 = arith.constant 0 : index
    %c0_4 = arith.constant 0 : index
    %4 = vector.load %arg3[%c0_3, %c0_4] : memref<1x128xf32, #tpu.memory_space<vmem>>, vector<1x128xf32>
    %5 = vector.broadcast %4 : vector<1x128xf32> to vector<16x128xf32>
    %6 = arith.addf %3, %5 : vector<16x128xf32>
    %cst_5 = arith.constant 0.000000e+00 : f32
    %7 = vector.broadcast %cst_5 : f32 to vector<16x128xf32>
    %8 = arith.maximumf %6, %7 : vector<16x128xf32>
    %9 = arith.truncf %8 : vector<16x128xf32> to vector<16x128xbf16>
    %c0_6 = arith.constant 0 : index
    %c0_7 = arith.constant 0 : index
    %10 = vector.load %arg4[%c0_6, %c0_7] : memref<128x128xbf16, #tpu.memory_space<vmem>>, vector<128x128xbf16>
    %cst_8 = arith.constant dense<0.000000e+00> : vector<16x128xf32>
    %11 = tpu.matmul %9, %10, %cst_8 {dimension_numbers = #tpu.dot_dimension_numbers<[1], [0], [0], [1], [0, 0, 1, 1], [], []>} : vector<16x128xbf16>, vector<128x128xbf16>, vector<16x128xf32> -> vector<16x128xf32>
    %c0_9 = arith.constant 0 : index
    %c0_10 = arith.constant 0 : index
    %12 = vector.load %arg5[%c0_9, %c0_10] : memref<1x128xf32, #tpu.memory_space<vmem>>, vector<1x128xf32>
    %13 = vector.broadcast %12 : vector<1x128xf32> to vector<16x128xf32>
    %14 = arith.addf %11, %13 : vector<16x128xf32>
    %cst_11 = arith.constant 0.000000e+00 : f32
    %15 = vector.broadcast %cst_11 : f32 to vector<16x128xf32>
    %16 = arith.maximumf %14, %15 : vector<16x128xf32>
    %17 = arith.truncf %16 : vector<16x128xf32> to vector<16x128xbf16>
    %c0_12 = arith.constant 0 : index
    %c0_13 = arith.constant 0 : index
    %18 = vector.load %arg6[%c0_12, %c0_13] : memref<128x128xbf16, #tpu.memory_space<vmem>>, vector<128x128xbf16>
    %cst_14 = arith.constant dense<0.000000e+00> : vector<16x128xf32>
    %19 = tpu.matmul %17, %18, %cst_14 {dimension_numbers = #tpu.dot_dimension_numbers<[1], [0], [0], [1], [0, 0, 1, 1], [], []>} : vector<16x128xbf16>, vector<128x128xbf16>, vector<16x128xf32> -> vector<16x128xf32>
    %c0_15 = arith.constant 0 : index
    %c0_16 = arith.constant 0 : index
    %20 = vector.load %arg7[%c0_15, %c0_16] : memref<1x128xf32, #tpu.memory_space<vmem>>, vector<1x128xf32>
    %21 = vector.broadcast %20 : vector<1x128xf32> to vector<16x128xf32>
    %22 = arith.addf %19, %21 : vector<16x128xf32>
    %cst_17 = arith.constant 0.000000e+00 : f32
    %23 = vector.broadcast %cst_17 : f32 to vector<16x128xf32>
    %24 = arith.maximumf %22, %23 : vector<16x128xf32>
    %25 = arith.truncf %24 : vector<16x128xf32> to vector<16x128xbf16>
    %c0_18 = arith.constant 0 : index
    %c0_19 = arith.constant 0 : index
    %26 = vector.load %arg8[%c0_18, %c0_19] : memref<128x8xbf16, #tpu.memory_space<vmem>>, vector<128x8xbf16>
    %cst_20 = arith.constant dense<0.000000e+00> : vector<16x8xf32>
    %27 = tpu.matmul %25, %26, %cst_20 {dimension_numbers = #tpu.dot_dimension_numbers<[1], [0], [0], [1], [0, 0, 1, 1], [], []>} : vector<16x128xbf16>, vector<128x8xbf16>, vector<16x8xf32> -> vector<16x8xf32>
    %c0_21 = arith.constant 0 : index
    %c0_22 = arith.constant 0 : index
    %28 = vector.load %arg9[%c0_21, %c0_22] : memref<1x8xf32, #tpu.memory_space<vmem>>, vector<1x8xf32>
    %29 = vector.broadcast %28 : vector<1x8xf32> to vector<16x8xf32>
    %30 = arith.addf %27, %29 : vector<16x8xf32>
    %c0_23 = arith.constant 0 : index
    %c0_24 = arith.constant 0 : index
    %31 = vector.load %arg10[%c0_23, %c0_24] : memref<16x8xf32, #tpu.memory_space<vmem>>, vector<16x8xf32>
    tpu.vector_store %arg10[%c0_23, %c0_24], %30 {strides = array<i32>} : memref<16x8xf32, #tpu.memory_space<vmem>>, vector<16x8xf32>,
    return
  }
  func.func @transform_0(%arg0: i32) -> (i32, i32) {
    %c0_i32 = arith.constant 0 : i32
    %c0_i32_0 = arith.constant 0 : i32
    return %arg0, %c0_i32 : i32, i32
  }
  func.func @transform_1(%arg0: i32) -> (i32, i32) {
    %c0_i32 = arith.constant 0 : i32
    %c0_i32_0 = arith.constant 0 : i32
    %c0_i32_1 = arith.constant 0 : i32
    return %c0_i32, %c0_i32_0 : i32, i32
  }
  func.func @transform_2(%arg0: i32) -> (i32, i32) {
    %c0_i32 = arith.constant 0 : i32
    %c0_i32_0 = arith.constant 0 : i32
    %c0_i32_1 = arith.constant 0 : i32
    return %c0_i32, %c0_i32_0 : i32, i32
  }
  func.func @transform_3(%arg0: i32) -> (i32, i32) {
    %c0_i32 = arith.constant 0 : i32
    %c0_i32_0 = arith.constant 0 : i32
    %c0_i32_1 = arith.constant 0 : i32
    return %c0_i32, %c0_i32_0 : i32, i32
  }
  func.func @transform_4(%arg0: i32) -> (i32, i32) {
    %c0_i32 = arith.constant 0 : i32
    %c0_i32_0 = arith.constant 0 : i32
    %c0_i32_1 = arith.constant 0 : i32
    return %c0_i32, %c0_i32_0 : i32, i32
  }
  func.func @transform_5(%arg0: i32) -> (i32, i32) {
    %c0_i32 = arith.constant 0 : i32
    %c0_i32_0 = arith.constant 0 : i32
    %c0_i32_1 = arith.constant 0 : i32
    return %c0_i32, %c0_i32_0 : i32, i32
  }
  func.func @transform_6(%arg0: i32) -> (i32, i32) {
    %c0_i32 = arith.constant 0 : i32
    %c0_i32_0 = arith.constant 0 : i32
    %c0_i32_1 = arith.constant 0 : i32
    return %c0_i32, %c0_i32_0 : i32, i32
  }
  func.func @transform_7(%arg0: i32) -> (i32, i32) {
    %c0_i32 = arith.constant 0 : i32
    %c0_i32_0 = arith.constant 0 : i32
    %c0_i32_1 = arith.constant 0 : i32
    return %c0_i32, %c0_i32_0 : i32, i32
  }
  func.func @transform_8(%arg0: i32) -> (i32, i32) {
    %c0_i32 = arith.constant 0 : i32
    %c0_i32_0 = arith.constant 0 : i32
    %c0_i32_1 = arith.constant 0 : i32
    return %c0_i32, %c0_i32_0 : i32, i32
  }
  func.func @transform_9(%arg0: i32) -> (i32, i32) {
    %c0_i32 = arith.constant 0 : i32
    %c0_i32_0 = arith.constant 0 : i32
    return %arg0, %c0_i32 : i32, i32
  }
}

module attributes {stable_mosaic.version = 11 : i64} {
  func.func @decoder_kernel(%arg0: i32, %arg1: memref<16x16xf32, #tpu.memory_space<vmem>>, %arg2: memref<16x128xbf16, #tpu.memory_space<vmem>>, %arg3: memref<1x128xf32, #tpu.memory_space<vmem>>, %arg4: memref<128x128xbf16, #tpu.memory_space<vmem>>, %arg5: memref<1x128xf32, #tpu.memory_space<vmem>>, %arg6: memref<128x128xbf16, #tpu.memory_space<vmem>>, %arg7: memref<1x128xf32, #tpu.memory_space<vmem>>, %arg8: memref<128x8xbf16, #tpu.memory_space<vmem>>, %arg9: memref<1x8xf32, #tpu.memory_space<vmem>>, %arg10: memref<16x8xf32, #tpu.memory_space<vmem>>) attributes {dimension_semantics = [#tpu.dimension_semantics<parallel>], iteration_bounds = array<i64: 2>, scalar_prefetch = 0 : i64, scratch_operands = 0 : i64, tpu.core_type = #tpu.core_type<tc>, window_params = [{transform_indices = @transform_0, window_bounds = array<i64: 16, 16>}, {pipeline_mode = #tpu.pipeline_mode<synchronous>, transform_indices = @transform_1, window_bounds = array<i64: 16, 128>}, {pipeline_mode = #tpu.pipeline_mode<synchronous>, transform_indices = @transform_2, window_bounds = array<i64: 1, 128>}, {pipeline_mode = #tpu.pipeline_mode<synchronous>, transform_indices = @transform_3, window_bounds = array<i64: 128, 128>}, {pipeline_mode = #tpu.pipeline_mode<synchronous>, transform_indices = @transform_4, window_bounds = array<i64: 1, 128>}, {pipeline_mode = #tpu.pipeline_mode<synchronous>, transform_indices = @transform_5, window_bounds = array<i64: 128, 128>}, {pipeline_mode = #tpu.pipeline_mode<synchronous>, transform_indices = @transform_6, window_bounds = array<i64: 1, 128>}, {pipeline_mode = #tpu.pipeline_mode<synchronous>, transform_indices = @transform_7, window_bounds = array<i64: 128, 8>}, {pipeline_mode = #tpu.pipeline_mode<synchronous>, transform_indices = @transform_8, window_bounds = array<i64: 1, 8>}, {transform_indices = @transform_9, window_bounds = array<i64: 16, 8>}]} {
    %c0 = arith.constant 0 : index
    %c0_0 = arith.constant 0 : index
    %0 = vector.load %arg1[%c0, %c0_0] : memref<16x16xf32, #tpu.memory_space<vmem>>, vector<16x16xf32>
    %1 = arith.truncf %0 : vector<16x16xf32> to vector<16x16xbf16>
    %c0_1 = arith.constant 0 : index
    %c0_2 = arith.constant 0 : index
    %2 = vector.load %arg2[%c0_1, %c0_2] : memref<16x128xbf16, #tpu.memory_space<vmem>>, vector<16x128xbf16>
    %cst = arith.constant dense<0.000000e+00> : vector<16x128xf32>
    %3 = tpu.matmul %1, %2, %cst {dimension_numbers = #tpu.dot_dimension_numbers<[1], [0], [0], [1], [0, 0, 1, 1], [], []>} : vector<16x16xbf16>, vector<16x128xbf16>, vector<16x128xf32> -> vector<16x128xf32>
    %c0_3 = arith.constant 0 : index
    %c0_4 = arith.constant 0 : index
    %4 = vector.load %arg3[%c0_3, %c0_4] : memref<1x128xf32, #tpu.memory_space<vmem>>, vector<1x128xf32>
    %5 = vector.broadcast %4 : vector<1x128xf32> to vector<16x128xf32>
    %6 = arith.addf %3, %5 : vector<16x128xf32>
    %cst_5 = arith.constant 0.000000e+00 : f32
    %7 = vector.broadcast %cst_5 : f32 to vector<16x128xf32>
    %8 = arith.maximumf %6, %7 : vector<16x128xf32>
    %9 = arith.truncf %8 : vector<16x128xf32> to vector<16x128xbf16>
    %c0_6 = arith.constant 0 : index
    %c0_7 = arith.constant 0 : index
    %10 = vector.load %arg4[%c0_6, %c0_7] : memref<128x128xbf16, #tpu.memory_space<vmem>>, vector<128x128xbf16>
    %cst_8 = arith.constant dense<0.000000e+00> : vector<16x128xf32>
    %11 = tpu.matmul %9, %10, %cst_8 {dimension_numbers = #tpu.dot_dimension_numbers<[1], [0], [0], [1], [0, 0, 1, 1], [], []>} : vector<16x128xbf16>, vector<128x128xbf16>, vector<16x128xf32> -> vector<16x128xf32>
    %c0_9 = arith.constant 0 : index
    %c0_10 = arith.constant 0 : index
    %12 = vector.load %arg5[%c0_9, %c0_10] : memref<1x128xf32, #tpu.memory_space<vmem>>, vector<1x128xf32>
    %13 = vector.broadcast %12 : vector<1x128xf32> to vector<16x128xf32>
    %14 = arith.addf %11, %13 : vector<16x128xf32>
    %cst_11 = arith.constant 0.000000e+00 : f32
    %15 = vector.broadcast %cst_11 : f32 to vector<16x128xf32>
    %16 = arith.maximumf %14, %15 : vector<16x128xf32>
    %17 = arith.truncf %16 : vector<16x128xf32> to vector<16x128xbf16>
    %c0_12 = arith.constant 0 : index
    %c0_13 = arith.constant 0 : index
    %18 = vector.load %arg6[%c0_12, %c0_13] : memref<128x128xbf16, #tpu.memory_space<vmem>>, vector<128x128xbf16>
    %cst_14 = arith.constant dense<0.000000e+00> : vector<16x128xf32>
    %19 = tpu.matmul %17, %18, %cst_14 {dimension_numbers = #tpu.dot_dimension_numbers<[1], [0], [0], [1], [0, 0, 1, 1], [], []>} : vector<16x128xbf16>, vector<128x128xbf16>, vector<16x128xf32> -> vector<16x128xf32>
    %c0_15 = arith.constant 0 : index
    %c0_16 = arith.constant 0 : index
    %20 = vector.load %arg7[%c0_15, %c0_16] : memref<1x128xf32, #tpu.memory_space<vmem>>, vector<1x128xf32>
    %21 = vector.broadcast %20 : vector<1x128xf32> to vector<16x128xf32>
    %22 = arith.addf %19, %21 : vector<16x128xf32>
    %cst_17 = arith.constant 0.000000e+00 : f32
    %23 = vector.broadcast %cst_17 : f32 to vector<16x128xf32>
    %24 = arith.maximumf %22, %23 : vector<16x128xf32>
    %25 = arith.truncf %24 : vector<16x128xf32> to vector<16x128xbf16>
    %c0_18 = arith.constant 0 : index
    %c0_19 = arith.constant 0 : index
    %26 = vector.load %arg8[%c0_18, %c0_19] : memref<128x8xbf16, #tpu.memory_space<vmem>>, vector<128x8xbf16>
    %cst_20 = arith.constant dense<0.000000e+00> : vector<16x8xf32>
    %27 = tpu.matmul %25, %26, %cst_20 {dimension_numbers = #tpu.dot_dimension_numbers<[1], [0], [0], [1], [0, 0, 1, 1], [], []>} : vector<16x128xbf16>, vector<128x8xbf16>, vector<16x8xf32> -> vector<16x8xf32>
    %c0_21 = arith.constant 0 : index
    %c0_22 = arith.constant 0 : index
    %28 = vector.load %arg9[%c0_21, %c0_22] : memref<1x8xf32, #tpu.memory_space<vmem>>, vector<1x8xf32>
    %29 = vector.broadcast %28 : vector<1x8xf32> to vector<16x8xf32>
    %30 = arith.addf %27, %29 : vector<16x8xf32>
    %c0_23 = arith.constant 0 : index
    %c0_24 = arith.constant 0 : index
    %31 = vector.load %arg10[%c0_23, %c0_24] : memref<16x8xf32, #tpu.memory_space<vmem>>, vector<16x8xf32>
    tpu.vector_store %arg10[%c0_23, %c0_24], %30 {strides = array<i32>} : memref<16x8xf32, #tpu.memory_space<vmem>>, vector<16x8xf32>,
    return
  }
  func.func @transform_0(%arg0: i32) -> (i32, i32) {
    %c0_i32 = arith.constant 0 : i32
    %c0_i32_0 = arith.constant 0 : i32
    return %arg0, %c0_i32 : i32, i32
  }
  func.func @transform_1(%arg0: i32) -> (i32, i32) {
    %c0_i32 = arith.constant 0 : i32
    %c0_i32_0 = arith.constant 0 : i32
    %c0_i32_1 = arith.constant 0 : i32
    return %c0_i32, %c0_i32_0 : i32, i32
  }
  func.func @transform_2(%arg0: i32) -> (i32, i32) {
    %c0_i32 = arith.constant 0 : i32
    %c0_i32_0 = arith.constant 0 : i32
    %c0_i32_1 = arith.constant 0 : i32
    return %c0_i32, %c0_i32_0 : i32, i32
  }
  func.func @transform_3(%arg0: i32) -> (i32, i32) {
    %c0_i32 = arith.constant 0 : i32
    %c0_i32_0 = arith.constant 0 : i32
    %c0_i32_1 = arith.constant 0 : i32
    return %c0_i32, %c0_i32_0 : i32, i32
  }
  func.func @transform_4(%arg0: i32) -> (i32, i32) {
    %c0_i32 = arith.constant 0 : i32
    %c0_i32_0 = arith.constant 0 : i32
    %c0_i32_1 = arith.constant 0 : i32
    return %c0_i32, %c0_i32_0 : i32, i32
  }
  func.func @transform_5(%arg0: i32) -> (i32, i32) {
    %c0_i32 = arith.constant 0 : i32
    %c0_i32_0 = arith.constant 0 : i32
    %c0_i32_1 = arith.constant 0 : i32
    return %c0_i32, %c0_i32_0 : i32, i32
  }
  func.func @transform_6(%arg0: i32) -> (i32, i32) {
    %c0_i32 = arith.constant 0 : i32
    %c0_i32_0 = arith.constant 0 : i32
    %c0_i32_1 = arith.constant 0 : i32
    return %c0_i32, %c0_i32_0 : i32, i32
  }
  func.func @transform_7(%arg0: i32) -> (i32, i32) {
    %c0_i32 = arith.constant 0 : i32
    %c0_i32_0 = arith.constant 0 : i32
    %c0_i32_1 = arith.constant 0 : i32
    return %c0_i32, %c0_i32_0 : i32, i32
  }
  func.func @transform_8(%arg0: i32) -> (i32, i32) {
    %c0_i32 = arith.constant 0 : i32
    %c0_i32_0 = arith.constant 0 : i32
    %c0_i32_1 = arith.constant 0 : i32
    return %c0_i32, %c0_i32_0 : i32, i32
  }
  func.func @transform_9(%arg0: i32) -> (i32, i32) {
    %c0_i32 = arith.constant 0 : i32
    %c0_i32_0 = arith.constant 0 : i32
    return %arg0, %c0_i32 : i32, i32
  }
}

</mosaic_0001>

<bundles_post_ra>
// kernel: tpu_custom_call.1
= control target key start
LH: loop header
LB: loop body
LE: loop exit
PB: predicated region body
PF: predicated region fallthrough
CT: control target
= control target key end

     0   :  { %14 = vsyncpa [#allocation3], 0  ;;  %s1110_s30 = smov 0   ;;  %s1251_s0 = inlined_call_operand.vmem [shape: f32[32,16], index: 0, kind: input, shape index: {}]   ;;  %s1252_s1 = inlined_call_operand.vmem [shape: bf16[16,128], index: 1, kind: input, shape index: {}]   ;;  %s1253_s2 = inlined_call_operand.vmem [shape: f32[1,128], index: 2, kind: input, shape index: {}]   ;;  %s1254_s3 = inlined_call_operand.vmem [shape: bf16[128,128], index: 3, kind: input, shape index: {}]   ;;  %s1255_s4 = inlined_call_operand.vmem [shape: f32[1,128], index: 4, kind: input, shape index: {}]   ;;  %s1256_s5 = inlined_call_operand.hbm [shape: bf16[128,128], index: 5, kind: input, shape index: {}]   ;;  %s1257_s6 = inlined_call_operand.vmem [shape: f32[1,128], index: 6, kind: input, shape index: {}]   ;;  %s1258_s7 = inlined_call_operand.vmem [shape: bf16[128,8], index: 7, kind: input, shape index: {}]   ;;  %s1259_s8 = inlined_call_operand.vmem [shape: f32[1,8], index: 8, kind: input, shape index: {}]   ;;  %s1260_s9 = inlined_call_operand.vmem [shape: f32[32,8], index: 9, kind: output, shape index: {}]  }
   0x1 LB: > { %s831_s10 = sadd.s32 4294967295, %s1053_s30   ;;  %p833_p0 = scmp.ge.s32.totalorder %s1053_s30, 1  ;;  %s1053_s30 = sphi %s1110_s30, %s20_s30  }
   0x2   : > { %p245_p1 = scmp.lt.s32.totalorder %s1053_s30, 3  ;;  %s1055_s11 = smov [#allocation2]  }
   0x3   : > { %s269_s12 = sshll.u32 %s1055_s11, 4  ;;  %p1122_p3 = scmp.eq.s32.totalorder %s831_s10, 0  ;;  %s270_s12 = int_to_ptr.vmem [resolvable:$true] %s269_s12 }
   0x4   : > { %p1118_p2 = pnand %p833_p0, %p245_p1  ;;  %s1028_s15 = scalar_lea.vmem %s270_s12, 1024 }
   0x5   : > { %p1029_p7 = scmp.ne.s32.totalorder %s270_s12, %s1028_s15  ;;  %p1036_p10 = scmp.lt.s32.totalorder %s270_s12, %s270_s12 }
   0x6   : > { %p973_p4 = pneg %p1118_p2  ;;  %p1037_p11 = scmp.lt.s32.totalorder %s1028_s15, %s1028_s15 }
   0x8   : > { %p974_p5 = pnand %p1122_p3, %p973_p4  ;;  %p1038_p12 = por %p1037_p11, %p1036_p10 }
   0xa   : > { %p1019_p6 = pneg %p974_p5 }
   0xc   : > { %p1031_p8 = pnand %p1029_p7, %p1019_p6 }
   0xe   : > { %p1032_p9 = pneg %p1031_p8 }
  0x10   : > { %p1039_p13 = pnand %p1038_p12, %p1032_p9 }
  0x12   : > { %1042 = shalt.err (!%p1039_p13)
}
  0x13   : > { %s1056_s16 = smov 64   ;;  %s1057_s17 = smov 4  }
  0x14   : > { %976 = dma.hbm_to_vmem [thread:$0]  (!%p974_p5), %s1256_s5, 1024, %s270_s12, [#allocation3], %s1056_s16, %s1056_s16, %s1057_s17  }
  0x15   : > { %303 = sbr.rel (%p1118_p2) target bundleno = 845 (0x34d), region = 56 }
  0x1a   : > { %1048 = dma.done.wait (%p1122_p3), [#allocation3], 1024  }
  0x1b   : > { %1050 = vsyncadd (%p1122_p3), [#allocation3], 4294966272  ;;  %s838_s20 = sshll.u32 %s831_s10, 1  ;;  %v1058_v0 = vmov 0.0   ;;  %vm1059_vm0 = vmmov 0   ;;  %v992_v1 = vld [vmem:[%s1252_s1] sm:$0xff]  }
  0x1c   : > { %903 = vmatprep.subr.bf16.mxu0 %v1058_v0  ;;  %905 = vmatprep.mubr.msk.bf16.mxu0 %vm1059_vm0, %v1058_v0  ;;  %p340_p0 = scmp.lt.s32.totalorder %s838_s20, 3  ;;  %vm370_vm1 = vcmask 130048   ;;  %v993_v5 = vld [vmem:[%s1254_s3 + $0x38] sm:$0xff]   ;;  %v994_v6 = vld [vmem:[%s1254_s3 + $0x30] sm:$0xff]   ;;  %v995_v7 = vld [vmem:[%s1254_s3 + $0x28] sm:$0xff]   ;;  %vm760_vm2 = vcmask 64512  }
  0x1d   : > { %909 = vmatprep.subr.bf16.mxu1 %v1058_v0  ;;  %925 = vmatprep.mubr.msk.bf16.mxu1 %vm1059_vm0, %v1058_v0  ;;  %v996_v8 = vld [vmem:[%s1254_s3 + $0x20] sm:$0xff]   ;;  %v997_v9 = vld [vmem:[%s1254_s3 + $0x18] sm:$0xff]   ;;  %v998_v10 = vld [vmem:[%s1254_s3 + $0x10] sm:$0xff]  }
  0x1e   : > { %s1264_s20 = smov (!%p340_p0, %s838_s20), 3  ;;  %904 = vmatpush3.bf16.msra.mxu0 %v992_v1  ;;  %910 = vmatpush3.bf16.msra.mxu1 %v993_v5  ;;  %v999_v11 = vld [vmem:[%s1254_s3 + $0x8] sm:$0xff]   ;;  %v1000_v12 = vld [vmem:[%s1254_s3] sm:$0xff]   ;;  %v1001_v13 = vld [vmem:[#allocation2 + $0x38] sm:$0xff]  }
  0x1f   : > { %s839_s21 = sshll.u32 %s1264_s20, 3  ;;  %929 = vmatprep.subr.bf16.mxu0 %v1058_v0  ;;  %911 = vmatprep.subr.bf16.mxu1 %v1058_v0  ;;  %v1002_v14 = vld [vmem:[#allocation2 + $0x30] sm:$0xff]   ;;  %v1003_v15 = vld [vmem:[#allocation2 + $0x28] sm:$0xff]   ;;  %v1004_v16 = vld [vmem:[#allocation2 + $0x20] sm:$0xff]  }
  0x20   : > { %s343_s24 = scalar_lea.vmem %s1251_s0, %s839_s21  ;;  %v1005_v17 = vld [vmem:[#allocation2 + $0x18] sm:$0xff]   ;;  %v842_v18 = vld [vmem:[%s1253_s2] ss:$0 sm:$0xff]  ;;  %v1006_v28 = vld [vmem:[#allocation2 + $0x10] sm:$0xff]   ;;  %s349_s13 = scalar_lea.vmem %s1260_s9, %s839_s21 }
  0x21   : > { %v352_v2 = vld [vmem:[%s343_s24] sm:$0xff]  ;;  %v353_v3 = vld [vmem:[%s343_s24 + $0x8] sm:$0xff]  ;;  %v1009_v31 = vld [vmem:[%s1258_s7 + $0x38] sm:$0xff]  }
  0x22   : > { %v354_v4 = vpack.c.bf16 %v353_v3, %v352_v2  ;;  %912 = vmatpush3.bf16.msra.mxu1 %v994_v6  ;;  %v1007_v29 = vld [vmem:[#allocation2 + $0x8] sm:$0xff]   ;;  %v1008_v30 = vld [vmem:[#allocation2] sm:$0xff]   ;;  %v1010_v32 = vld [vmem:[%s1258_s7 + $0x30] sm:$0xff]  }
  0x23   : > { %913 = vmatprep.subr.bf16.mxu1 %v1058_v0  ;;  %v1011_v33 = vld [vmem:[%s1258_s7 + $0x28] sm:$0xff]   ;;  %v1012_v34 = vld [vmem:[%s1258_s7 + $0x20] sm:$0xff]   ;;  %v1013_v35 = vld [vmem:[%s1258_s7 + $0x18] sm:$0xff]  }
  0x24   : > { %906 = vmatmul.mubr.msk.bf16.vlgmr.msra.gmra.mxu0 %vm370_vm1, %v354_v4  ;;  %v845_v36 = vld [vmem:[%s1255_s4] ss:$0 sm:$0xff]  ;;  %v1014_v46 = vld [vmem:[%s1258_s7 + $0x10] sm:$0xff]   ;;  %v1015_v47 = vld [vmem:[%s1258_s7 + $0x8] sm:$0xff]  }
  0x25   : > { %945 = vmatprep.mubr.msk.bf16.mxu0 %vm1059_vm0, %v1058_v0  ;;  %930 = vmatpush3.bf16.msra.mxu0 %v1001_v13  ;;  %v1016_v48 = vld [vmem:[%s1258_s7] sm:$0xff]  }
  0x26   : > { %914 = vmatpush3.bf16.msra.mxu1 %v995_v7  ;;  %931 = vmatprep.subr.bf16.mxu0 %v1058_v0  ;;  %v854_v49 = vld [vmem:[%s1257_s6] ss:$0 sm:$0xff] }
  0x27   : > { %915 = vmatprep.subr.bf16.mxu1 %v1058_v0  ;;  %v863_v59 = vld [vmem:[%s1259_s8] ss:$0 sm:$0xff] }
  0x29   : > { %932 = vmatpush3.bf16.msra.mxu0 %v1002_v14 }
  0x2a   : > { %916 = vmatpush3.bf16.msra.mxu1 %v996_v8  ;;  %933 = vmatprep.subr.bf16.mxu0 %v1058_v0 }
  0x2b   : > { %917 = vmatprep.subr.bf16.mxu1 %v1058_v0 }
  0x2d   : > { %934 = vmatpush3.bf16.msra.mxu0 %v1003_v15 }
  0x2e   : > { %918 = vmatpush3.bf16.msra.mxu1 %v997_v9  ;;  %935 = vmatprep.subr.bf16.mxu0 %v1058_v0 }
  0x2f   : > { %919 = vmatprep.subr.bf16.mxu1 %v1058_v0 }
  0x31   : > { %936 = vmatpush3.bf16.msra.mxu0 %v1004_v16 }
  0x32   : > { %920 = vmatpush3.bf16.msra.mxu1 %v998_v10  ;;  %937 = vmatprep.subr.bf16.mxu0 %v1058_v0 }
  0x33   : > { %921 = vmatprep.subr.bf16.mxu1 %v1058_v0 }
  0x35   : > { %938 = vmatpush3.bf16.msra.mxu0 %v1005_v17 }
  0x36   : > { %922 = vmatpush3.bf16.msra.mxu1 %v999_v11  ;;  %939 = vmatprep.subr.bf16.mxu0 %v1058_v0 }
  0x37   : > { %923 = vmatprep.subr.bf16.mxu1 %v1058_v0 }
  0x39   : > { %940 = vmatpush3.bf16.msra.mxu0 %v1006_v28 }
  0x3a   : > { %924 = vmatpush3.bf16.msra.mxu1 %v1000_v12  ;;  %941 = vmatprep.subr.bf16.mxu0 %v1058_v0 }
  0x3b   : > { %949 = vmatprep.subr.bf16.mxu1 %v1058_v0 }
  0x3d   : > { %942 = vmatpush3.bf16.msra.mxu0 %v1007_v29 }
  0x3e   : > { %943 = vmatprep.subr.bf16.mxu0 %v1058_v0 }
  0x41   : > { %944 = vmatpush3.bf16.msra.mxu0 %v1008_v30 }
  0xe4   : > { %v408_v19 = vpop.f32.mrf.mxu0 }
  0xe5   : > { %v409_v21 = vadd.f32 %v842_v18, %v408_v19 }
  0xe6   : > { %v907_v20 = vpop.f32.mrf.mxu0 }
  0xe7   : > { %v415_v25 = vmax.f32 %v409_v21, 0.0 }
  0xe8   : > { %v411_v22 = vpop.f32.mrf.mxu0 }
  0xe9   : > { %v412_v23 = vadd.f32 %v842_v18, %v411_v22 }
  0xea   : > { %v908_v24 = vpop.f32.mrf.mxu0 }
  0xeb   : > { %v416_v26 = vmax.f32 %v412_v23, 0.0 }
  0xed   : > { %v417_v27 = vpack.c.bf16 %v416_v26, %v415_v25 }
  0xef   : > { %926 = vmatmul.mubr.bf16.vlgmr.msra.gmra.mxu1 %v417_v27 }
  0xf0   : > { %965 = vmatprep.mubr.msk.bf16.mxu1 %vm1059_vm0, %v1058_v0  ;;  %950 = vmatpush3.bf16.msra.mxu1 %v1009_v31 }
  0xf1   : > { %951 = vmatprep.subr.bf16.mxu1 %v1058_v0 }
  0xf4   : > { %952 = vmatpush3.bf16.msra.mxu1 %v1010_v32 }
  0xf5   : > { %953 = vmatprep.subr.bf16.mxu1 %v1058_v0 }
  0xf8   : > { %954 = vmatpush3.bf16.msra.mxu1 %v1011_v33 }
  0xf9   : > { %955 = vmatprep.subr.bf16.mxu1 %v1058_v0 }
  0xfc   : > { %956 = vmatpush3.bf16.msra.mxu1 %v1012_v34 }
  0xfd   : > { %957 = vmatprep.subr.bf16.mxu1 %v1058_v0 }
 0x100   : > { %958 = vmatpush3.bf16.msra.mxu1 %v1013_v35 }
 0x101   : > { %959 = vmatprep.subr.bf16.mxu1 %v1058_v0 }
 0x104   : > { %960 = vmatpush3.bf16.msra.mxu1 %v1014_v46 }
 0x105   : > { %961 = vmatprep.subr.bf16.mxu1 %v1058_v0 }
 0x108   : > { %962 = vmatpush3.bf16.msra.mxu1 %v1015_v47 }
 0x109   : > { %963 = vmatprep.subr.bf16.mxu1 %v1058_v0 }
 0x10c   : > { %964 = vmatpush3.bf16.msra.mxu1 %v1016_v48 }
 0x1af   : > { %v523_v37 = vpop.f32.mrf.mxu1 }
 0x1b0   : > { %v524_v39 = vadd.f32 %v845_v36, %v523_v37 }
 0x1b1   : > { %v927_v38 = vpop.f32.mrf.mxu1 }
 0x1b2   : > { %v530_v43 = vmax.f32 %v524_v39, 0.0 }
 0x1b3   : > { %v526_v40 = vpop.f32.mrf.mxu1 }
 0x1b4   : > { %v527_v41 = vadd.f32 %v845_v36, %v526_v40 }
 0x1b5   : > { %v928_v42 = vpop.f32.mrf.mxu1 }
 0x1b6   : > { %v531_v44 = vmax.f32 %v527_v41, 0.0 }
 0x1b8   : > { %v532_v45 = vpack.c.bf16 %v531_v44, %v530_v43 }
 0x1ba   : > { %946 = vmatmul.mubr.bf16.vlgmr.msra.gmra.mxu0 %v532_v45 }
 0x27a   : > { %v638_v50 = vpop.f32.mrf.mxu0 }
 0x27b   : > { %v639_v52 = vadd.f32 %v854_v49, %v638_v50 }
 0x27c   : > { %v947_v51 = vpop.f32.mrf.mxu0 }
 0x27d   : > { %v645_v56 = vmax.f32 %v639_v52, 0.0 }
 0x27e   : > { %v641_v53 = vpop.f32.mrf.mxu0 }
 0x27f   : > { %v642_v54 = vadd.f32 %v854_v49, %v641_v53 }
 0x280   : > { %v948_v55 = vpop.f32.mrf.mxu0 }
 0x281   : > { %v646_v57 = vmax.f32 %v642_v54, 0.0 }
 0x283   : > { %v647_v58 = vpack.c.bf16 %v646_v57, %v645_v56 }
 0x285   : > { %966 = vmatmul.mubr.bf16.vlgmr.msra.gmra.mxu1 %v647_v58 }
 0x345   : > { %v753_v60 = vpop.f32.mrf.mxu1 }
 0x346   : > { %v754_v61 = vadd.f32 %v863_v59, %v753_v60 }
 0x347   : > { %v967_v62 = vpop.f32.mrf.mxu1 }
 0x348   : > { %761 = vst.msk [vmem:[%s349_s13] sm:$0xff] %vm760_vm2, %v754_v61 }
 0x349   : > { %v756_v63 = vpop.f32.mrf.mxu1 }
 0x34a   : > { %v757_v0 = vadd.f32 %v863_v59, %v756_v63 }
 0x34b   : > { %v968_v1 = vpop.f32.mrf.mxu1 }
 0x34c   : > { %762 = vst.msk [vmem:[%s349_s13 + $0x8] sm:$0xff] %vm760_vm2, %v757_v0 }
 0x34d PF: > { %s20_s30 = sadd.s32 1, %s1053_s30  }
 0x34e   : > { %p17_p1 = scmp.ge.s32.totalorder %s20_s30, 4  }
 0x350   :  { %19 = sbr.rel (!%p17_p1) target bundleno = 1 (0x1), region = 91 }
 0x355   :  { %785 = vsyncpa [#allocation3], 1 }
 0x356   :  { %787 = vsyncpa [#allocation3 + $0x1], 1 }

// kernel: tpu_custom_call.1
= control target key start
LH: loop header
LB: loop body
LE: loop exit
PB: predicated region body
PF: predicated region fallthrough
CT: control target
= control target key end

     0   :  { %14 = vsyncpa [#allocation3], 0  ;;  %s1110_s30 = smov 0   ;;  %s1251_s0 = inlined_call_operand.vmem [shape: f32[32,16], index: 0, kind: input, shape index: {}]   ;;  %s1252_s1 = inlined_call_operand.vmem [shape: bf16[16,128], index: 1, kind: input, shape index: {}]   ;;  %s1253_s2 = inlined_call_operand.vmem [shape: f32[1,128], index: 2, kind: input, shape index: {}]   ;;  %s1254_s3 = inlined_call_operand.vmem [shape: bf16[128,128], index: 3, kind: input, shape index: {}]   ;;  %s1255_s4 = inlined_call_operand.vmem [shape: f32[1,128], index: 4, kind: input, shape index: {}]   ;;  %s1256_s5 = inlined_call_operand.hbm [shape: bf16[128,128], index: 5, kind: input, shape index: {}]   ;;  %s1257_s6 = inlined_call_operand.vmem [shape: f32[1,128], index: 6, kind: input, shape index: {}]   ;;  %s1258_s7 = inlined_call_operand.vmem [shape: bf16[128,8], index: 7, kind: input, shape index: {}]   ;;  %s1259_s8 = inlined_call_operand.vmem [shape: f32[1,8], index: 8, kind: input, shape index: {}]   ;;  %s1260_s9 = inlined_call_operand.vmem [shape: f32[32,8], index: 9, kind: output, shape index: {}]  }
   0x1 LB: > { %s831_s10 = sadd.s32 4294967295, %s1053_s30   ;;  %p833_p0 = scmp.ge.s32.totalorder %s1053_s30, 1  ;;  %s1053_s30 = sphi %s1110_s30, %s20_s30  }
   0x2   : > { %p245_p1 = scmp.lt.s32.totalorder %s1053_s30, 3  ;;  %s1055_s11 = smov [#allocation2]  }
   0x3   : > { %s269_s12 = sshll.u32 %s1055_s11, 4  ;;  %p1122_p3 = scmp.eq.s32.totalorder %s831_s10, 0  ;;  %s270_s12 = int_to_ptr.vmem [resolvable:$true] %s269_s12 }
   0x4   : > { %p1118_p2 = pnand %p833_p0, %p245_p1  ;;  %s1028_s15 = scalar_lea.vmem %s270_s12, 1024 }
   0x5   : > { %p1029_p7 = scmp.ne.s32.totalorder %s270_s12, %s1028_s15  ;;  %p1036_p10 = scmp.lt.s32.totalorder %s270_s12, %s270_s12 }
   0x6   : > { %p973_p4 = pneg %p1118_p2  ;;  %p1037_p11 = scmp.lt.s32.totalorder %s1028_s15, %s1028_s15 }
   0x8   : > { %p974_p5 = pnand %p1122_p3, %p973_p4  ;;  %p1038_p12 = por %p1037_p11, %p1036_p10 }
   0xa   : > { %p1019_p6 = pneg %p974_p5 }
   0xc   : > { %p1031_p8 = pnand %p1029_p7, %p1019_p6 }
   0xe   : > { %p1032_p9 = pneg %p1031_p8 }
  0x10   : > { %p1039_p13 = pnand %p1038_p12, %p1032_p9 }
  0x12   : > { %1042 = shalt.err (!%p1039_p13)
}
  0x13   : > { %s1056_s16 = smov 64   ;;  %s1057_s17 = smov 4  }
  0x14   : > { %976 = dma.hbm_to_vmem [thread:$0]  (!%p974_p5), %s1256_s5, 1024, %s270_s12, [#allocation3], %s1056_s16, %s1056_s16, %s1057_s17  }
  0x15   : > { %303 = sbr.rel (%p1118_p2) target bundleno = 845 (0x34d), region = 56 }
  0x1a   : > { %1048 = dma.done.wait (%p1122_p3), [#allocation3], 1024  }
  0x1b   : > { %1050 = vsyncadd (%p1122_p3), [#allocation3], 4294966272  ;;  %s838_s20 = sshll.u32 %s831_s10, 1  ;;  %v1058_v0 = vmov 0.0   ;;  %vm1059_vm0 = vmmov 0   ;;  %v992_v1 = vld [vmem:[%s1252_s1] sm:$0xff]  }
  0x1c   : > { %903 = vmatprep.subr.bf16.mxu0 %v1058_v0  ;;  %905 = vmatprep.mubr.msk.bf16.mxu0 %vm1059_vm0, %v1058_v0  ;;  %p340_p0 = scmp.lt.s32.totalorder %s838_s20, 3  ;;  %vm370_vm1 = vcmask 130048   ;;  %v993_v5 = vld [vmem:[%s1254_s3 + $0x38] sm:$0xff]   ;;  %v994_v6 = vld [vmem:[%s1254_s3 + $0x30] sm:$0xff]   ;;  %v995_v7 = vld [vmem:[%s1254_s3 + $0x28] sm:$0xff]   ;;  %vm760_vm2 = vcmask 64512  }
  0x1d   : > { %909 = vmatprep.subr.bf16.mxu1 %v1058_v0  ;;  %925 = vmatprep.mubr.msk.bf16.mxu1 %vm1059_vm0, %v1058_v0  ;;  %v996_v8 = vld [vmem:[%s1254_s3 + $0x20] sm:$0xff]   ;;  %v997_v9 = vld [vmem:[%s1254_s3 + $0x18] sm:$0xff]   ;;  %v998_v10 = vld [vmem:[%s1254_s3 + $0x10] sm:$0xff]  }
  0x1e   : > { %s1264_s20 = smov (!%p340_p0, %s838_s20), 3  ;;  %904 = vmatpush3.bf16.msra.mxu0 %v992_v1  ;;  %910 = vmatpush3.bf16.msra.mxu1 %v993_v5  ;;  %v999_v11 = vld [vmem:[%s1254_s3 + $0x8] sm:$0xff]   ;;  %v1000_v12 = vld [vmem:[%s1254_s3] sm:$0xff]   ;;  %v1001_v13 = vld [vmem:[#allocation2 + $0x38] sm:$0xff]  }
  0x1f   : > { %s839_s21 = sshll.u32 %s1264_s20, 3  ;;  %929 = vmatprep.subr.bf16.mxu0 %v1058_v0  ;;  %911 = vmatprep.subr.bf16.mxu1 %v1058_v0  ;;  %v1002_v14 = vld [vmem:[#allocation2 + $0x30] sm:$0xff]   ;;  %v1003_v15 = vld [vmem:[#allocation2 + $0x28] sm:$0xff]   ;;  %v1004_v16 = vld [vmem:[#allocation2 + $0x20] sm:$0xff]  }
  0x20   : > { %s343_s24 = scalar_lea.vmem %s1251_s0, %s839_s21  ;;  %v1005_v17 = vld [vmem:[#allocation2 + $0x18] sm:$0xff]   ;;  %v842_v18 = vld [vmem:[%s1253_s2] ss:$0 sm:$0xff]  ;;  %v1006_v28 = vld [vmem:[#allocation2 + $0x10] sm:$0xff]   ;;  %s349_s13 = scalar_lea.vmem %s1260_s9, %s839_s21 }
  0x21   : > { %v352_v2 = vld [vmem:[%s343_s24] sm:$0xff]  ;;  %v353_v3 = vld [vmem:[%s343_s24 + $0x8] sm:$0xff]  ;;  %v1009_v31 = vld [vmem:[%s1258_s7 + $0x38] sm:$0xff]  }
  0x22   : > { %v354_v4 = vpack.c.bf16 %v353_v3, %v352_v2  ;;  %912 = vmatpush3.bf16.msra.mxu1 %v994_v6  ;;  %v1007_v29 = vld [vmem:[#allocation2 + $0x8] sm:$0xff]   ;;  %v1008_v30 = vld [vmem:[#allocation2] sm:$0xff]   ;;  %v1010_v32 = vld [vmem:[%s1258_s7 + $0x30] sm:$0xff]  }
  0x23   : > { %913 = vmatprep.subr.bf16.mxu1 %v1058_v0  ;;  %v1011_v33 = vld [vmem:[%s1258_s7 + $0x28] sm:$0xff]   ;;  %v1012_v34 = vld [vmem:[%s1258_s7 + $0x20] sm:$0xff]   ;;  %v1013_v35 = vld [vmem:[%s1258_s7 + $0x18] sm:$0xff]  }
  0x24   : > { %906 = vmatmul.mubr.msk.bf16.vlgmr.msra.gmra.mxu0 %vm370_vm1, %v354_v4  ;;  %v845_v36 = vld [vmem:[%s1255_s4] ss:$0 sm:$0xff]  ;;  %v1014_v46 = vld [vmem:[%s1258_s7 + $0x10] sm:$0xff]   ;;  %v1015_v47 = vld [vmem:[%s1258_s7 + $0x8] sm:$0xff]  }
  0x25   : > { %945 = vmatprep.mubr.msk.bf16.mxu0 %vm1059_vm0, %v1058_v0  ;;  %930 = vmatpush3.bf16.msra.mxu0 %v1001_v13  ;;  %v1016_v48 = vld [vmem:[%s1258_s7] sm:$0xff]  }
  0x26   : > { %914 = vmatpush3.bf16.msra.mxu1 %v995_v7  ;;  %931 = vmatprep.subr.bf16.mxu0 %v1058_v0  ;;  %v854_v49 = vld [vmem:[%s1257_s6] ss:$0 sm:$0xff] }
  0x27   : > { %915 = vmatprep.subr.bf16.mxu1 %v1058_v0  ;;  %v863_v59 = vld [vmem:[%s1259_s8] ss:$0 sm:$0xff] }
  0x29   : > { %932 = vmatpush3.bf16.msra.mxu0 %v1002_v14 }
  0x2a   : > { %916 = vmatpush3.bf16.msra.mxu1 %v996_v8  ;;  %933 = vmatprep.subr.bf16.mxu0 %v1058_v0 }
  0x2b   : > { %917 = vmatprep.subr.bf16.mxu1 %v1058_v0 }
  0x2d   : > { %934 = vmatpush3.bf16.msra.mxu0 %v1003_v15 }
  0x2e   : > { %918 = vmatpush3.bf16.msra.mxu1 %v997_v9  ;;  %935 = vmatprep.subr.bf16.mxu0 %v1058_v0 }
  0x2f   : > { %919 = vmatprep.subr.bf16.mxu1 %v1058_v0 }
  0x31   : > { %936 = vmatpush3.bf16.msra.mxu0 %v1004_v16 }
  0x32   : > { %920 = vmatpush3.bf16.msra.mxu1 %v998_v10  ;;  %937 = vmatprep.subr.bf16.mxu0 %v1058_v0 }
  0x33   : > { %921 = vmatprep.subr.bf16.mxu1 %v1058_v0 }
  0x35   : > { %938 = vmatpush3.bf16.msra.mxu0 %v1005_v17 }
  0x36   : > { %922 = vmatpush3.bf16.msra.mxu1 %v999_v11  ;;  %939 = vmatprep.subr.bf16.mxu0 %v1058_v0 }
  0x37   : > { %923 = vmatprep.subr.bf16.mxu1 %v1058_v0 }
  0x39   : > { %940 = vmatpush3.bf16.msra.mxu0 %v1006_v28 }
  0x3a   : > { %924 = vmatpush3.bf16.msra.mxu1 %v1000_v12  ;;  %941 = vmatprep.subr.bf16.mxu0 %v1058_v0 }
  0x3b   : > { %949 = vmatprep.subr.bf16.mxu1 %v1058_v0 }
  0x3d   : > { %942 = vmatpush3.bf16.msra.mxu0 %v1007_v29 }
  0x3e   : > { %943 = vmatprep.subr.bf16.mxu0 %v1058_v0 }
  0x41   : > { %944 = vmatpush3.bf16.msra.mxu0 %v1008_v30 }
  0xe4   : > { %v408_v19 = vpop.f32.mrf.mxu0 }
  0xe5   : > { %v409_v21 = vadd.f32 %v842_v18, %v408_v19 }
  0xe6   : > { %v907_v20 = vpop.f32.mrf.mxu0 }
  0xe7   : > { %v415_v25 = vmax.f32 %v409_v21, 0.0 }
  0xe8   : > { %v411_v22 = vpop.f32.mrf.mxu0 }
  0xe9   : > { %v412_v23 = vadd.f32 %v842_v18, %v411_v22 }
  0xea   : > { %v908_v24 = vpop.f32.mrf.mxu0 }
  0xeb   : > { %v416_v26 = vmax.f32 %v412_v23, 0.0 }
  0xed   : > { %v417_v27 = vpack.c.bf16 %v416_v26, %v415_v25 }
  0xef   : > { %926 = vmatmul.mubr.bf16.vlgmr.msra.gmra.mxu1 %v417_v27 }
  0xf0   : > { %965 = vmatprep.mubr.msk.bf16.mxu1 %vm1059_vm0, %v1058_v0  ;;  %950 = vmatpush3.bf16.msra.mxu1 %v1009_v31 }
  0xf1   : > { %951 = vmatprep.subr.bf16.mxu1 %v1058_v0 }
  0xf4   : > { %952 = vmatpush3.bf16.msra.mxu1 %v1010_v32 }
  0xf5   : > { %953 = vmatprep.subr.bf16.mxu1 %v1058_v0 }
  0xf8   : > { %954 = vmatpush3.bf16.msra.mxu1 %v1011_v33 }
  0xf9   : > { %955 = vmatprep.subr.bf16.mxu1 %v1058_v0 }
  0xfc   : > { %956 = vmatpush3.bf16.msra.mxu1 %v1012_v34 }
  0xfd   : > { %957 = vmatprep.subr.bf16.mxu1 %v1058_v0 }
 0x100   : > { %958 = vmatpush3.bf16.msra.mxu1 %v1013_v35 }
 0x101   : > { %959 = vmatprep.subr.bf16.mxu1 %v1058_v0 }
 0x104   : > { %960 = vmatpush3.bf16.msra.mxu1 %v1014_v46 }
 0x105   : > { %961 = vmatprep.subr.bf16.mxu1 %v1058_v0 }
 0x108   : > { %962 = vmatpush3.bf16.msra.mxu1 %v1015_v47 }
 0x109   : > { %963 = vmatprep.subr.bf16.mxu1 %v1058_v0 }
 0x10c   : > { %964 = vmatpush3.bf16.msra.mxu1 %v1016_v48 }
 0x1af   : > { %v523_v37 = vpop.f32.mrf.mxu1 }
 0x1b0   : > { %v524_v39 = vadd.f32 %v845_v36, %v523_v37 }
 0x1b1   : > { %v927_v38 = vpop.f32.mrf.mxu1 }
 0x1b2   : > { %v530_v43 = vmax.f32 %v524_v39, 0.0 }
 0x1b3   : > { %v526_v40 = vpop.f32.mrf.mxu1 }
 0x1b4   : > { %v527_v41 = vadd.f32 %v845_v36, %v526_v40 }
 0x1b5   : > { %v928_v42 = vpop.f32.mrf.mxu1 }
 0x1b6   : > { %v531_v44 = vmax.f32 %v527_v41, 0.0 }
 0x1b8   : > { %v532_v45 = vpack.c.bf16 %v531_v44, %v530_v43 }
 0x1ba   : > { %946 = vmatmul.mubr.bf16.vlgmr.msra.gmra.mxu0 %v532_v45 }
 0x27a   : > { %v638_v50 = vpop.f32.mrf.mxu0 }
 0x27b   : > { %v639_v52 = vadd.f32 %v854_v49, %v638_v50 }
 0x27c   : > { %v947_v51 = vpop.f32.mrf.mxu0 }
 0x27d   : > { %v645_v56 = vmax.f32 %v639_v52, 0.0 }
 0x27e   : > { %v641_v53 = vpop.f32.mrf.mxu0 }
 0x27f   : > { %v642_v54 = vadd.f32 %v854_v49, %v641_v53 }
 0x280   : > { %v948_v55 = vpop.f32.mrf.mxu0 }
 0x281   : > { %v646_v57 = vmax.f32 %v642_v54, 0.0 }
 0x283   : > { %v647_v58 = vpack.c.bf16 %v646_v57, %v645_v56 }
 0x285   : > { %966 = vmatmul.mubr.bf16.vlgmr.msra.gmra.mxu1 %v647_v58 }
 0x345   : > { %v753_v60 = vpop.f32.mrf.mxu1 }
 0x346   : > { %v754_v61 = vadd.f32 %v863_v59, %v753_v60 }
 0x347   : > { %v967_v62 = vpop.f32.mrf.mxu1 }
 0x348   : > { %761 = vst.msk [vmem:[%s349_s13] sm:$0xff] %vm760_vm2, %v754_v61 }
 0x349   : > { %v756_v63 = vpop.f32.mrf.mxu1 }
 0x34a   : > { %v757_v0 = vadd.f32 %v863_v59, %v756_v63 }
 0x34b   : > { %v968_v1 = vpop.f32.mrf.mxu1 }
 0x34c   : > { %762 = vst.msk [vmem:[%s349_s13 + $0x8] sm:$0xff] %vm760_vm2, %v757_v0 }
 0x34d PF: > { %s20_s30 = sadd.s32 1, %s1053_s30  }
 0x34e   : > { %p17_p1 = scmp.ge.s32.totalorder %s20_s30, 4  }
 0x350   :  { %19 = sbr.rel (!%p17_p1) target bundleno = 1 (0x1), region = 91 }
 0x355   :  { %785 = vsyncpa [#allocation3], 1 }
 0x356   :  { %787 = vsyncpa [#allocation3 + $0x1], 1 }

</bundles_post_ra>
